<compile_context>
chip_gen: v7x
topology: tpu7x:2x2x1
jax: 0.10.0
libtpu: 0.0.40
codegen_flags: <defaults>
</compile_context>

<pallas_src>
import jax
import jax.numpy as jnp
from jax.experimental import pallas as pl
from jax.experimental.pallas import tpu as pltpu


LANE = 128
NEG_PAD = -1e30  # pad-class bias: exp(NEG_PAD - m) == 0 in f32


def _round_up(x, m):
    return ((x + m - 1) // m) * m


def _pad2d(a, shape):
    return jnp.pad(a, [(0, t - s) for s, t in zip(a.shape, shape)])


def ffnn_kernel(x_ref, w1_ref, b1_ref, w2_ref, b2_ref, w3_ref, b3_ref, o_ref):
    """Fused (x@W1+b1)->relu->(@W2+b2)->relu->(@W3+b3)->log_softmax.

    bf16 MXU operands, f32 accumulation, f32 elementwise. The class axis is
    padded to 128 lanes for the compute; only the real n_classes columns are
    stored.
    """
    # In-kernel f32 -> bf16 cast (saves the wrapper-side convert+pad HBM pass).
    x = x_ref[...].astype(jnp.bfloat16)                    # [TILE_B, in_feat]

    # Layer 1: Linear + ReLU (MXU matmul, f32 accumulation)
    h1 = jnp.dot(x, w1_ref[...], preferred_element_type=jnp.float32)
    h1 = jnp.maximum(h1 + b1_ref[...], 0.0)                # [TILE_B, H1p] f32

    # Layer 2: Linear + ReLU
    h2 = jnp.dot(h1.astype(jnp.bfloat16), w2_ref[...],
                 preferred_element_type=jnp.float32)
    h2 = jnp.maximum(h2 + b2_ref[...], 0.0)                # [TILE_B, H2p] f32

    # Output layer (classes padded to 128 lanes; pad biases are -1e30).
    logits = jnp.dot(h2.astype(jnp.bfloat16), w3_ref[...],
                     preferred_element_type=jnp.float32)
    logits = logits + b3_ref[...]                          # [TILE_B, Np] f32

    # log_softmax over the padded class axis; pad columns contribute exp(.)=0.
    m = jnp.max(logits, axis=-1, keepdims=True)
    shifted = logits - m
    lse = jnp.log(jnp.sum(jnp.exp(shifted), axis=-1, keepdims=True))
    logp = shifted - lse

    # Store only the real classes: output HBM bytes drop 12.8x vs the padded
    # f32 slab and the wrapper no longer reslices the whole output.
    n_cls = o_ref.shape[-1]
    o_ref[...] = logp[:, :n_cls].astype(o_ref.dtype)


def prepare_params(params):
    """Pad + cast weights/biases ONCE (call at init, reuse every forward)."""
    w1, b1, w2, b2, w3, b3 = params
    in_feat, h1 = w1.shape
    h2 = w2.shape[1]
    n_classes = w3.shape[1]
    H1p = _round_up(h1, LANE)
    H2p = _round_up(h2, LANE)
    Np = _round_up(n_classes, LANE)

    # bf16 matmul operands. The K dim of W1 stays the true in_feat because x
    # is fed unpadded; hidden dims are zero-padded to 128 multiples (exact:
    # ReLU(0)=0 and zero weight rows contribute nothing).
    w1p = _pad2d(w1.astype(jnp.float32), (in_feat, H1p)).astype(jnp.bfloat16)
    w2p = _pad2d(w2.astype(jnp.float32), (H1p, H2p)).astype(jnp.bfloat16)
    w3p = _pad2d(w3.astype(jnp.float32), (H2p, Np)).astype(jnp.bfloat16)

    # f32 [1, H] bias rows (lane-resident). Hidden pads are 0; class pads are
    # -1e30 so they vanish under log_softmax.
    b1p = _pad2d(b1.astype(jnp.float32).reshape(1, h1), (1, H1p))
    b2p = _pad2d(b2.astype(jnp.float32).reshape(1, h2), (1, H2p))
    b3p = jnp.concatenate(
        [b3.astype(jnp.float32),
         jnp.full((Np - n_classes,), NEG_PAD, jnp.float32)]).reshape(1, Np)

    return (w1p, b1p, w2p, b2p, w3p, b3p), n_classes


def ffnn_forward(x_nchw, prepared, n_classes, *, tile_b=512,
                 core_parallel=False, vmem_limit_bytes=None):
    """x_nchw: [B, C, H, W] float32 -> log-probabilities [B, n_classes] f32.

    tile_b: batch tile; sweep 512..2048. On v7x keep the grid length >= 2
            (two TensorCores) and raise vmem_limit_bytes if sweeping above
            ~2048 (64 MiB physical / 32 MiB scoped default there).
    core_parallel: set True on v7x to shard the batch grid across its 2
            TensorCores (pltpu.CORE_PARALLEL); keep False on v5e/v6e.
    """
    w1p, b1p, w2p, b2p, w3p, b3p = prepared
    B = x_nchw.shape[0]
    in_feat = w1p.shape[0]

    # Free reshape only -- no pad, no cast (the bf16 cast happens in-kernel).
    x2d = x_nchw.reshape(B, in_feat)

    # Batch tile: either a multiple of 8 (<= B) or exactly B (full dim); both
    # are legal block shapes. Trailing partial blocks are masked by Pallas.
    tb = min(_round_up(max(tile_b, 8), 8), B)
    grid = (pl.cdiv(B, tb),)

    # Constant index_maps keep every weight/bias VMEM-resident across grid
    # steps (no re-DMA per tile). Default double-buffering on these ~130 KB of
    # constants is cheap; switch to pipeline_mode=pl.Buffered(1) if VMEM gets
    # tight at very large tile_b.
    const = lambda a: pl.BlockSpec(a.shape, lambda i: (0,) * a.ndim)

    if core_parallel:
        dim_sem = (pltpu.CORE_PARALLEL,)   # v7x: split batch grid across 2 TCs
    else:
        dim_sem = ("parallel",)

    out = pl.pallas_call(
        ffnn_kernel,
        out_shape=jax.ShapeDtypeStruct((B, n_classes), jnp.float32),
        grid=grid,
        in_specs=[
            pl.BlockSpec((tb, in_feat), lambda i: (i, 0)),   # x: batch-tiled
            const(w1p), const(b1p),                          # VMEM-resident
            const(w2p), const(b2p),
            const(w3p), const(b3p),
        ],
        out_specs=pl.BlockSpec((tb, n_classes), lambda i: (i, 0)),
        compiler_params=pltpu.CompilerParams(
            dimension_semantics=dim_sem,
            vmem_limit_bytes=vmem_limit_bytes),
    )(x2d, w1p, b1p, w2p, b2p, w3p, b3p)

    return out


def init_params(key, in_feat, h1, h2, n_classes):
    """Deterministic small-scale init (stand-in for nn.Linear defaults)."""
    ks = jax.random.split(key, 6)
    w1 = jax.random.normal(ks[0], (in_feat, h1), jnp.float32) * (1.0 / jnp.sqrt(in_feat))
    b1 = jax.random.normal(ks[1], (h1,), jnp.float32) * 0.01
    w2 = jax.random.normal(ks[2], (h1, h2), jnp.float32) * (1.0 / jnp.sqrt(h1))
    b2 = jax.random.normal(ks[3], (h2,), jnp.float32) * 0.01
    w3 = jax.random.normal(ks[4], (h2, n_classes), jnp.float32) * (1.0 / jnp.sqrt(h2))
    b3 = jax.random.normal(ks[5], (n_classes,), jnp.float32) * 0.01
    return (w1, b1, w2, b2, w3, b3)


def _reference(x_nchw, params):
    """Pure-JAX reference with matching mixed precision (bf16 operands, f32 acc)."""
    w1, b1, w2, b2, w3, b3 = params
    B = x_nchw.shape[0]
    x = x_nchw.reshape(B, w1.shape[0]).astype(jnp.bfloat16)
    h1 = jnp.maximum(jnp.dot(x, w1.astype(jnp.bfloat16),
                             preferred_element_type=jnp.float32) + b1, 0.0)
    h2 = jnp.maximum(jnp.dot(h1.astype(jnp.bfloat16), w2.astype(jnp.bfloat16),
                             preferred_element_type=jnp.float32) + b2, 0.0)
    logits = jnp.dot(h2.astype(jnp.bfloat16), w3.astype(jnp.bfloat16),
                     preferred_element_type=jnp.float32) + b3
    return jax.nn.log_softmax(logits, axis=-1)


if __name__ == "__main__":
    key = jax.random.PRNGKey(0)
    kx, kp = jax.random.split(key)

    # Small MNIST-like input: batch=2, 1 channel, 16x16 spatial -> 256 features.
    B, C, H, W = 2, 1, 16, 16
    in_feat = C * H * W
    H1, H2, N_CLASSES = 128, 64, 10

    x = jax.random.normal(kx, (B, C, H, W), jnp.float32)
    params = init_params(kp, in_feat, H1, H2, N_CLASSES)

    # Weights padded/cast exactly once (not per forward call).
    prepared, n_classes = prepare_params(params)

    out = ffnn_forward(x, prepared, n_classes)   # tile_b clamps to B=2 here
    out = jax.block_until_ready(out)
    assert out.shape == (B, N_CLASSES)
    assert bool(jnp.all(jnp.isfinite(out))), "non-finite output"

    # Correctness vs precision-matched pure-JAX reference.
    ref = _reference(x, params)
    assert jnp.allclose(out, ref, atol=1e-3, rtol=1e-3), "mismatch vs JAX reference"

    print("KERNEL_OK")
</pallas_src>

<mosaic_0001>
module attributes {stable_mosaic.version = 11 : i64} {
  func.func @ffnn_kernel(%arg0: i32, %arg1: memref<2x256xf32, #tpu.memory_space<vmem>>, %arg2: memref<256x128xbf16, #tpu.memory_space<vmem>>, %arg3: memref<1x128xf32, #tpu.memory_space<vmem>>, %arg4: memref<128x128xbf16, #tpu.memory_space<vmem>>, %arg5: memref<1x128xf32, #tpu.memory_space<vmem>>, %arg6: memref<128x128xbf16, #tpu.memory_space<vmem>>, %arg7: memref<1x128xf32, #tpu.memory_space<vmem>>, %arg8: memref<2x10xf32, #tpu.memory_space<vmem>>) attributes {dimension_semantics = [#tpu.dimension_semantics<parallel>], iteration_bounds = array<i64: 1>, scalar_prefetch = 0 : i64, scratch_operands = 0 : i64, tpu.core_type = #tpu.core_type<tc>, window_params = [{transform_indices = @transform_0, window_bounds = array<i64: 2, 256>}, {pipeline_mode = #tpu.pipeline_mode<synchronous>, transform_indices = @transform_1, window_bounds = array<i64: 256, 128>}, {pipeline_mode = #tpu.pipeline_mode<synchronous>, transform_indices = @transform_2, window_bounds = array<i64: 1, 128>}, {pipeline_mode = #tpu.pipeline_mode<synchronous>, transform_indices = @transform_3, window_bounds = array<i64: 128, 128>}, {pipeline_mode = #tpu.pipeline_mode<synchronous>, transform_indices = @transform_4, window_bounds = array<i64: 1, 128>}, {pipeline_mode = #tpu.pipeline_mode<synchronous>, transform_indices = @transform_5, window_bounds = array<i64: 128, 128>}, {pipeline_mode = #tpu.pipeline_mode<synchronous>, transform_indices = @transform_6, window_bounds = array<i64: 1, 128>}, {transform_indices = @transform_7, window_bounds = array<i64: 2, 10>}]} {
    %c0 = arith.constant 0 : index
    %c0_0 = arith.constant 0 : index
    %0 = vector.load %arg1[%c0, %c0_0] : memref<2x256xf32, #tpu.memory_space<vmem>>, vector<2x256xf32>
    %1 = arith.truncf %0 : vector<2x256xf32> to vector<2x256xbf16>
    %c0_1 = arith.constant 0 : index
    %c0_2 = arith.constant 0 : index
    %2 = vector.load %arg2[%c0_1, %c0_2] : memref<256x128xbf16, #tpu.memory_space<vmem>>, vector<256x128xbf16>
    %cst = arith.constant dense<0.000000e+00> : vector<2x128xf32>
    %3 = tpu.matmul %1, %2, %cst {dimension_numbers = #tpu.dot_dimension_numbers<[1], [0], [0], [1], [0, 0, 1, 1], [], []>} : vector<2x256xbf16>, vector<256x128xbf16>, vector<2x128xf32> -> vector<2x128xf32>
    %c0_3 = arith.constant 0 : index
    %c0_4 = arith.constant 0 : index
    %4 = vector.load %arg3[%c0_3, %c0_4] : memref<1x128xf32, #tpu.memory_space<vmem>>, vector<1x128xf32>
    %5 = vector.broadcast %4 : vector<1x128xf32> to vector<2x128xf32>
    %6 = arith.addf %3, %5 : vector<2x128xf32>
    %cst_5 = arith.constant 0.000000e+00 : f32
    %7 = vector.broadcast %cst_5 : f32 to vector<2x128xf32>
    %8 = arith.maximumf %6, %7 : vector<2x128xf32>
    %9 = arith.truncf %8 : vector<2x128xf32> to vector<2x128xbf16>
    %c0_6 = arith.constant 0 : index
    %c0_7 = arith.constant 0 : index
    %10 = vector.load %arg4[%c0_6, %c0_7] : memref<128x128xbf16, #tpu.memory_space<vmem>>, vector<128x128xbf16>
    %cst_8 = arith.constant dense<0.000000e+00> : vector<2x128xf32>
    %11 = tpu.matmul %9, %10, %cst_8 {dimension_numbers = #tpu.dot_dimension_numbers<[1], [0], [0], [1], [0, 0, 1, 1], [], []>} : vector<2x128xbf16>, vector<128x128xbf16>, vector<2x128xf32> -> vector<2x128xf32>
    %c0_9 = arith.constant 0 : index
    %c0_10 = arith.constant 0 : index
    %12 = vector.load %arg5[%c0_9, %c0_10] : memref<1x128xf32, #tpu.memory_space<vmem>>, vector<1x128xf32>
    %13 = vector.broadcast %12 : vector<1x128xf32> to vector<2x128xf32>
    %14 = arith.addf %11, %13 : vector<2x128xf32>
    %cst_11 = arith.constant 0.000000e+00 : f32
    %15 = vector.broadcast %cst_11 : f32 to vector<2x128xf32>
    %16 = arith.maximumf %14, %15 : vector<2x128xf32>
    %17 = arith.truncf %16 : vector<2x128xf32> to vector<2x128xbf16>
    %c0_12 = arith.constant 0 : index
    %c0_13 = arith.constant 0 : index
    %18 = vector.load %arg6[%c0_12, %c0_13] : memref<128x128xbf16, #tpu.memory_space<vmem>>, vector<128x128xbf16>
    %cst_14 = arith.constant dense<0.000000e+00> : vector<2x128xf32>
    %19 = tpu.matmul %17, %18, %cst_14 {dimension_numbers = #tpu.dot_dimension_numbers<[1], [0], [0], [1], [0, 0, 1, 1], [], []>} : vector<2x128xbf16>, vector<128x128xbf16>, vector<2x128xf32> -> vector<2x128xf32>
    %c0_15 = arith.constant 0 : index
    %c0_16 = arith.constant 0 : index
    %20 = vector.load %arg7[%c0_15, %c0_16] : memref<1x128xf32, #tpu.memory_space<vmem>>, vector<1x128xf32>
    %21 = vector.broadcast %20 : vector<1x128xf32> to vector<2x128xf32>
    %22 = arith.addf %19, %21 : vector<2x128xf32>
    %cst_17 = arith.constant dense<0xFF800000> : vector<2xf32>
    %23 = vector.multi_reduction <maximumf>, %22, %cst_17 [1] : vector<2x128xf32> to vector<2xf32>
    %24 = vector.shape_cast %23 : vector<2xf32> to vector<2x1xf32>
    %25 = vector.broadcast %24 : vector<2x1xf32> to vector<2x128xf32>
    %26 = arith.subf %22, %25 : vector<2x128xf32>
    %27 = math.exp %26 : vector<2x128xf32>
    %cst_18 = arith.constant dense<0.000000e+00> : vector<2xf32>
    %28 = vector.multi_reduction <add>, %27, %cst_18 [1] : vector<2x128xf32> to vector<2xf32>
    %29 = vector.shape_cast %28 : vector<2xf32> to vector<2x1xf32>
    %30 = math.log %29 : vector<2x1xf32>
    %31 = vector.broadcast %30 : vector<2x1xf32> to vector<2x128xf32>
    %32 = arith.subf %26, %31 : vector<2x128xf32>
    %33 = vector.extract_strided_slice %32 {offsets = [0, 0], sizes = [2, 10], strides = [1, 1]} : vector<2x128xf32> to vector<2x10xf32>
    %c0_19 = arith.constant 0 : index
    %c0_20 = arith.constant 0 : index
    %34 = vector.load %arg8[%c0_19, %c0_20] : memref<2x10xf32, #tpu.memory_space<vmem>>, vector<2x10xf32>
    tpu.vector_store %arg8[%c0_19, %c0_20], %33 {strides = array<i32>} : memref<2x10xf32, #tpu.memory_space<vmem>>, vector<2x10xf32>,
    return
  }
  func.func @transform_0(%arg0: i32) -> (i32, i32) {
    %c0_i32 = arith.constant 0 : i32
    %c0_i32_0 = arith.constant 0 : i32
    return %arg0, %c0_i32 : i32, i32
  }
  func.func @transform_1(%arg0: i32) -> (i32, i32) {
    %c0_i32 = arith.constant 0 : i32
    %c0_i32_0 = arith.constant 0 : i32
    %c0_i32_1 = arith.constant 0 : i32
    return %c0_i32, %c0_i32_0 : i32, i32
  }
  func.func @transform_2(%arg0: i32) -> (i32, i32) {
    %c0_i32 = arith.constant 0 : i32
    %c0_i32_0 = arith.constant 0 : i32
    %c0_i32_1 = arith.constant 0 : i32
    return %c0_i32, %c0_i32_0 : i32, i32
  }
  func.func @transform_3(%arg0: i32) -> (i32, i32) {
    %c0_i32 = arith.constant 0 : i32
    %c0_i32_0 = arith.constant 0 : i32
    %c0_i32_1 = arith.constant 0 : i32
    return %c0_i32, %c0_i32_0 : i32, i32
  }
  func.func @transform_4(%arg0: i32) -> (i32, i32) {
    %c0_i32 = arith.constant 0 : i32
    %c0_i32_0 = arith.constant 0 : i32
    %c0_i32_1 = arith.constant 0 : i32
    return %c0_i32, %c0_i32_0 : i32, i32
  }
  func.func @transform_5(%arg0: i32) -> (i32, i32) {
    %c0_i32 = arith.constant 0 : i32
    %c0_i32_0 = arith.constant 0 : i32
    %c0_i32_1 = arith.constant 0 : i32
    return %c0_i32, %c0_i32_0 : i32, i32
  }
  func.func @transform_6(%arg0: i32) -> (i32, i32) {
    %c0_i32 = arith.constant 0 : i32
    %c0_i32_0 = arith.constant 0 : i32
    %c0_i32_1 = arith.constant 0 : i32
    return %c0_i32, %c0_i32_0 : i32, i32
  }
  func.func @transform_7(%arg0: i32) -> (i32, i32) {
    %c0_i32 = arith.constant 0 : i32
    %c0_i32_0 = arith.constant 0 : i32
    return %arg0, %c0_i32 : i32, i32
  }
}

</mosaic_0001>

<bundles_post_ra>
// kernel: tpu_custom_call.1
= control target key start
LH: loop header
LB: loop body
LE: loop exit
PB: predicated region body
PF: predicated region fallthrough
CT: control target
= control target key end

     0   :  { %12 = vsyncpa [#allocation3], 0  ;;  %s952_s0 = inlined_call_operand.hbm [shape: f32[2,256], index: 0, kind: input, shape index: {}]   ;;  %s953_s1 = inlined_call_operand.hbm [shape: bf16[256,128], index: 1, kind: input, shape index: {}]   ;;  %s954_s2 = inlined_call_operand.vmem [shape: f32[1,128], index: 2, kind: input, shape index: {}]   ;;  %s955_s3 = inlined_call_operand.hbm [shape: bf16[128,128], index: 3, kind: input, shape index: {}]   ;;  %s956_s4 = inlined_call_operand.vmem [shape: f32[1,128], index: 4, kind: input, shape index: {}]   ;;  %s957_s5 = inlined_call_operand.hbm [shape: bf16[128,128], index: 5, kind: input, shape index: {}]   ;;  %s958_s6 = inlined_call_operand.vmem [shape: f32[1,128], index: 6, kind: input, shape index: {}]   ;;  %s959_s7 = inlined_call_operand.hbm [shape: f32[2,10], index: 7, kind: output, shape index: {}]  }
   0x1   :  { %13 = vsyncpa [#allocation6], 0 }
   0x2   :  { %14 = vsyncpa [#allocation9], 0 }
   0x3   :  { %15 = vsyncpa [#allocation4], 0  ;;  %s807_s24 = smov [#allocation5]   ;;  %s689_s28 = scalar_lea.hbm %s953_s1, 2048 }
   0x4   :  { %s31_s25 = sshll.u32 %s807_s24, 4  ;;  %p690_p0 = scmp.ne.s32.totalorder %s953_s1, %s689_s28  ;;  %s32_s25 = int_to_ptr.vmem [resolvable:$true] %s31_s25 }
   0x5   :  { %p693_p1 = scmp.lt.u32.totalorder %s689_s28, %s953_s1 }
   0x7   :  { %p695_p2 = pnand %p693_p1, %p690_p0 }
   0x9   :  { %698 = shalt.err (!%p695_p2)
}
   0xa   :  { %s699_s10 = scalar_lea.vmem %s32_s25, 2048  ;;  %p704_p4 = scmp.lt.s32.totalorder %s32_s25, %s32_s25 }
   0xb   :  { %p700_p3 = scmp.ne.s32.totalorder %s32_s25, %s699_s10  ;;  %p705_p5 = scmp.lt.s32.totalorder %s699_s10, %s699_s10 }
   0xd   :  { %p706_p6 = por %p705_p5, %p704_p4 }
   0xf   :  { %p707_p7 = pnand %p706_p6, %p700_p3 }
  0x11   :  { %710 = shalt.err (!%p707_p7)
}
  0x12   :  { %s808_s11 = smov 64   ;;  %s809_s12 = smov 4  }
  0x13   :  { %37 = dma.hbm_to_vmem [thread:$0]  %s953_s1, 2048, %s32_s25, [#allocation6], %s808_s11, %s808_s11, %s809_s12  }
  0x14   :  { %s810_s15 = smov [#allocation2]   ;;  %s811_s17 = smov [#allocation7]  }
  0x15   :  { %s22_s16 = sshll.u32 %s810_s15, 4  ;;  %s45_s18 = sshll.u32 %s811_s17, 4  ;;  %s23_s16 = int_to_ptr.vmem [resolvable:$true] %s22_s16  ;;  %s46_s18 = int_to_ptr.vmem [resolvable:$true] %s45_s18 }
  0x16   :  { %s711_s21 = scalar_lea.hbm %s952_s0, 64 }
  0x17   :  { %p712_p8 = scmp.ne.s32.totalorder %s952_s0, %s711_s21  ;;  %p715_p9 = scmp.lt.u32.totalorder %s711_s21, %s952_s0 }
  0x19   :  { %p717_p10 = pnand %p715_p9, %p712_p8 }
  0x1b   :  { %720 = shalt.err (!%p717_p10)
}
  0x1c   :  { %s721_s1 = scalar_lea.vmem %s23_s16, 64  ;;  %p726_p12 = scmp.lt.s32.totalorder %s23_s16, %s23_s16 }
  0x1d   :  { %p722_p11 = scmp.ne.s32.totalorder %s23_s16, %s721_s1  ;;  %p727_p13 = scmp.lt.s32.totalorder %s721_s1, %s721_s1 }
  0x1f   :  { %p728_p0 = por %p727_p13, %p726_p12 }
  0x21   :  { %p729_p1 = pnand %p728_p0, %p722_p11 }
  0x23   :  { %732 = shalt.err (!%p729_p1)
}
  0x24   :  { %25 = dma.hbm_to_vmem [thread:$0]  %s952_s0, 64, %s23_s16, [#allocation3]  }
  0x25   :  { %s733_s30 = scalar_lea.hbm %s955_s3, 1024 }
  0x26   :  { %p734_p2 = scmp.ne.s32.totalorder %s955_s3, %s733_s30  ;;  %p737_p3 = scmp.lt.u32.totalorder %s733_s30, %s955_s3 }
  0x28   :  { %p739_p4 = pnand %p737_p3, %p734_p2 }
  0x2a   :  { %742 = shalt.err (!%p739_p4)
}
  0x2b   :  { %s743_s14 = scalar_lea.vmem %s46_s18, 1024  ;;  %p748_p6 = scmp.lt.s32.totalorder %s46_s18, %s46_s18 }
  0x2c   :  { %p744_p5 = scmp.ne.s32.totalorder %s46_s18, %s743_s14  ;;  %p749_p7 = scmp.lt.s32.totalorder %s743_s14, %s743_s14 }
  0x2e   :  { %p750_p8 = por %p749_p7, %p748_p6 }
  0x30   :  { %p751_p9 = pnand %p750_p8, %p744_p5 }
  0x32   :  { %754 = shalt.err (!%p751_p9)
}
  0x33   :  { %51 = dma.hbm_to_vmem [thread:$0]  %s955_s3, 1024, %s46_s18, [#allocation6], %s808_s11, %s808_s11, %s809_s12  }
  0x34   :  { %s812_s16 = smov [#allocation8]   ;;  %s755_s21 = scalar_lea.hbm %s957_s5, 1024 }
  0x35   :  { %s59_s17 = sshll.u32 %s812_s16, 4  ;;  %p756_p10 = scmp.ne.s32.totalorder %s957_s5, %s755_s21  ;;  %s60_s17 = int_to_ptr.vmem [resolvable:$true] %s59_s17 }
  0x36   :  { %p759_p11 = scmp.lt.u32.totalorder %s755_s21, %s957_s5 }
  0x38   :  { %p761_p12 = pnand %p759_p11, %p756_p10 }
  0x3a   :  { %764 = shalt.err (!%p761_p12)
}
  0x3b   :  { %s765_s1 = scalar_lea.vmem %s60_s17, 1024  ;;  %p770_p0 = scmp.lt.s32.totalorder %s60_s17, %s60_s17 }
  0x3c   :  { %p766_p13 = scmp.ne.s32.totalorder %s60_s17, %s765_s1  ;;  %p771_p1 = scmp.lt.s32.totalorder %s765_s1, %s765_s1 }
  0x3e   :  { %p772_p2 = por %p771_p1, %p770_p0 }
  0x40   :  { %p773_p3 = pnand %p772_p2, %p766_p13 }
  0x42   :  { %776 = shalt.err (!%p773_p3)
}
  0x43   :  { %65 = dma.hbm_to_vmem [thread:$0]  %s957_s5, 1024, %s60_s17, [#allocation9], %s808_s11, %s808_s11, %s809_s12  }
  0x44   :  { %799 = dma.done.wait [#allocation3], 64  }
  0x45   :  { %800 = vsyncadd [#allocation3], 4294967232 }
  0x46   :  { %801 = dma.done.wait [#allocation6], 3072  }
  0x47   :  { %802 = vsyncadd [#allocation6], 4294964224 }
  0x48   :  { %803 = dma.done.wait [#allocation9], 1024  }
  0x49   :  { %804 = vsyncadd [#allocation9], 4294966272  ;;  %v813_v0 = vmov 0.0   ;;  %v653_v1 = vld [vmem:[#allocation5 + $0x40] sm:$0xff]   ;;  %v655_v3 = vld [vmem:[#allocation5 + $0x48] sm:$0xff]   ;;  %vm814_vm0 = vmmov 0  }
  0x4a   :  { %604 = vmatprep.subr.bf16.mxu1 %v813_v0  ;;  %v654_v2 = vld [vmem:[#allocation5] sm:$0xff]   ;;  %564 = vmatprep.subr.bf16.mxu0 %v653_v1  ;;  %v656_v4 = vld [vmem:[#allocation5 + $0x8] sm:$0xff]   ;;  %v657_v5 = vld [vmem:[#allocation5 + $0x50] sm:$0xff]   ;;  %vm496_vm1 = vcmask 1041408   ;;  %vm509_vm2 = vcmask 74752  }
  0x4b   :  { %565 = vmatpush3.bf16.msra.mxu0 %v654_v2  ;;  %v658_v6 = vld [vmem:[#allocation5 + $0x10] sm:$0xff]   ;;  %v659_v7 = vld [vmem:[#allocation5 + $0x58] sm:$0xff]   ;;  %v661_v9 = vld [vmem:[#allocation5 + $0x60] sm:$0xff]   ;;  %620 = vmatprep.mubr.msk.bf16.mxu1 %vm814_vm0, %v813_v0 }
  0x4c   :  { %566 = vmatprep.subr.bf16.mxu0 %v655_v3  ;;  %v660_v8 = vld [vmem:[#allocation5 + $0x18] sm:$0xff]   ;;  %v662_v10 = vld [vmem:[#allocation5 + $0x20] sm:$0xff]   ;;  %v663_v11 = vld [vmem:[#allocation5 + $0x68] sm:$0xff]  }
  0x4d   :  { %v528_v12 = vld.sshfl [vmem:[#allocation2] sm:$0x33 pattern:$0x76325410]  ;;  %v669_v14 = vld [vmem:[#allocation7] sm:$0xff]   ;;  %v664_v15 = vld [vmem:[#allocation5 + $0x28] sm:$0xff]  }
  0x4e   :  { %v90_v13 = vcombine.high %v528_v12, %v528_v12  ;;  %605 = vmatpush3.bf16.msra.mxu1 %v669_v14  ;;  %v670_v17 = vld [vmem:[#allocation7 + $0x8] sm:$0xff]   ;;  %v665_v18 = vld [vmem:[#allocation5 + $0x70] sm:$0xff]   ;;  %v667_v20 = vld [vmem:[#allocation5 + $0x78] sm:$0xff]   ;;  %v93_v24 = vpack.c.bf16 %v528_v12, %v528_v12 }
  0x4f   :  { %567 = vmatpush3.bf16.msra.mxu0 %v656_v4  ;;  %606 = vmatprep.subr.bf16.mxu1 %v813_v0  ;;  %v666_v19 = vld [vmem:[#allocation5 + $0x30] sm:$0xff]   ;;  %v668_v22 = vld [vmem:[#allocation5 + $0x38] sm:$0xff]   ;;  %v673_v25 = vld [vmem:[#allocation7 + $0x20] sm:$0xff]  }
  0x50   :  { %568 = vmatprep.subr.bf16.mxu0 %v657_v5  ;;  %v94_v16 = vpack.c.bf16 %v90_v13, %v90_v13  ;;  %v671_v21 = vld [vmem:[#allocation7 + $0x10] sm:$0xff]   ;;  %v672_v23 = vld [vmem:[#allocation7 + $0x18] sm:$0xff]   ;;  %v674_v26 = vld [vmem:[#allocation7 + $0x28] sm:$0xff]  }
  0x51   :  { %v675_v27 = vld [vmem:[#allocation7 + $0x30] sm:$0xff]   ;;  %v676_v28 = vld [vmem:[#allocation7 + $0x38] sm:$0xff]   ;;  %v677_v29 = vld [vmem:[#allocation8] sm:$0xff]  }
  0x52   :  { %262 = vmatprep.mubr.bf16.mxu0 %v94_v16  ;;  %607 = vmatpush3.bf16.msra.mxu1 %v670_v17  ;;  %v678_v30 = vld [vmem:[#allocation8 + $0x8] sm:$0xff]   ;;  %v679_v31 = vld [vmem:[#allocation8 + $0x10] sm:$0xff]   ;;  %v680_v32 = vld [vmem:[#allocation8 + $0x18] sm:$0xff]  }
  0x53   :  { %569 = vmatpush3.bf16.msra.mxu0 %v658_v6  ;;  %608 = vmatprep.subr.bf16.mxu1 %v813_v0  ;;  %v681_v33 = vld [vmem:[#allocation8 + $0x20] sm:$0xff]   ;;  %v682_v34 = vld [vmem:[#allocation8 + $0x28] sm:$0xff]   ;;  %v529_v36 = vld [vmem:[%s954_s2] ss:$0 sm:$0xff] }
  0x54   :  { %570 = vmatprep.subr.bf16.mxu0 %v659_v7  ;;  %v683_v44 = vld [vmem:[#allocation8 + $0x30] sm:$0xff]   ;;  %v684_v45 = vld [vmem:[#allocation8 + $0x38] sm:$0xff]  }
  0x55   :  { %v546_v46 = vld [vmem:[%s956_s4] ss:$0 sm:$0xff]  ;;  %s815_s4 = smov [#allocation10]  }
  0x56   :  { %609 = vmatpush3.bf16.msra.mxu1 %v671_v21  ;;  %v555_v54 = vld [vmem:[%s958_s6] ss:$0 sm:$0xff]  ;;  %s517_s6 = sshll.u32 %s815_s4, 4  ;;  %s518_s6 = int_to_ptr.vmem [resolvable:$true] %s517_s6 }
  0x57   :  { %571 = vmatpush3.bf16.msra.mxu0 %v660_v8  ;;  %610 = vmatprep.subr.bf16.mxu1 %v813_v0  ;;  %s777_s28 = scalar_lea.vmem %s518_s6, 32  ;;  %p782_p5 = scmp.lt.s32.totalorder %s518_s6, %s518_s6 }
  0x58   :  { %572 = vmatprep.subr.bf16.mxu0 %v661_v9  ;;  %p778_p4 = scmp.ne.s32.totalorder %s518_s6, %s777_s28  ;;  %p783_p6 = scmp.lt.s32.totalorder %s777_s28, %s777_s28 }
  0x5a   :  { %611 = vmatpush3.bf16.msra.mxu1 %v672_v23  ;;  %p784_p7 = por %p783_p6, %p782_p5 }
  0x5b   :  { %573 = vmatpush3.bf16.msra.mxu0 %v662_v10  ;;  %612 = vmatprep.subr.bf16.mxu1 %v813_v0 }
  0x5c   :  { %574 = vmatprep.subr.bf16.mxu0 %v663_v11  ;;  %p785_p8 = pnand %p784_p7, %p778_p4 }
  0x5e   :  { %613 = vmatpush3.bf16.msra.mxu1 %v673_v25 }
  0x5f   :  { %575 = vmatpush3.bf16.msra.mxu0 %v664_v15  ;;  %614 = vmatprep.subr.bf16.mxu1 %v813_v0 }
  0x60   :  { %576 = vmatprep.subr.bf16.mxu0 %v665_v18 }
  0x62   :  { %615 = vmatpush3.bf16.msra.mxu1 %v674_v26 }
  0x63   :  { %577 = vmatpush3.bf16.msra.mxu0 %v666_v19  ;;  %616 = vmatprep.subr.bf16.mxu1 %v813_v0 }
  0x64   :  { %578 = vmatprep.subr.bf16.mxu0 %v667_v20 }
  0x66   :  { %617 = vmatpush3.bf16.msra.mxu1 %v675_v27 }
  0x67   :  { %579 = vmatpush3.bf16.msra.mxu0 %v668_v22  ;;  %618 = vmatprep.subr.bf16.mxu1 %v813_v0 }
  0x68   :  { %624 = vmatprep.subr.bf16.mxu0 %v813_v0 }
  0x6a   :  { %263 = vmatmul.mubr.bf16.vlgmr.msra.gmra.mrb[0].mxu0 %v93_v24  ;;  %619 = vmatpush3.bf16.msra.mxu1 %v676_v28 }
  0x6b   :  { %640 = vmatprep.mubr.msk.bf16.mxu0 %vm814_vm0, %v813_v0  ;;  %625 = vmatpush3.bf16.msra.mxu0 %v677_v29 }
  0x6c   :  { %626 = vmatprep.subr.bf16.mxu0 %v813_v0 }
  0x6f   :  { %627 = vmatpush3.bf16.msra.mxu0 %v678_v30 }
  0x70   :  { %628 = vmatprep.subr.bf16.mxu0 %v813_v0 }
  0x73   :  { %629 = vmatpush3.bf16.msra.mxu0 %v679_v31 }
  0x74   :  { %630 = vmatprep.subr.bf16.mxu0 %v813_v0 }
  0x77   :  { %631 = vmatpush3.bf16.msra.mxu0 %v680_v32 }
  0x78   :  { %632 = vmatprep.subr.bf16.mxu0 %v813_v0 }
  0x7b   :  { %633 = vmatpush3.bf16.msra.mxu0 %v681_v33 }
  0x7c   :  { %634 = vmatprep.subr.bf16.mxu0 %v813_v0 }
  0x7f   :  { %635 = vmatpush3.bf16.msra.mxu0 %v682_v34 }
  0x80   :  { %636 = vmatprep.subr.bf16.mxu0 %v813_v0 }
  0x83   :  { %637 = vmatpush3.bf16.msra.mxu0 %v683_v44 }
  0x84   :  { %638 = vmatprep.subr.bf16.mxu0 %v813_v0 }
  0x87   :  { %639 = vmatpush3.bf16.msra.mxu0 %v684_v45 }
 0x13d   :  { %v580_v35 = vpop.f32.mrb[0].mxu0 }
 0x13e   :  { %v581_v37 = vpop.f32.mrb[1].mxu0 }
 0x13f   :  { %v582_v38 = vadd.f32 %v581_v37, %v580_v35  ;;  %v583_v39 = vpop.f32.mrb[2].mxu0 }
 0x140   :  { %v584_v40 = vpop.f32.mrb[3].mxu0 }
 0x141   :  { %v265_v41 = vadd.f32 %v582_v38, %v529_v36 }
 0x143   :  { %v270_v42 = vmax.f32 %v265_v41, 0.0 }
 0x145   :  { %v271_v43 = vpack.c.bf16 %v270_v42, %v270_v42 }
 0x147   :  { %621 = vmatmul.mubr.bf16.vlgmr.msra.gmra.mrb[0].mxu1 %v271_v43 }
 0x21a   :  { %v377_v47 = vpop.f32.mrb[0].mxu1 }
 0x21b   :  { %v378_v48 = vadd.f32 %v546_v46, %v377_v47  ;;  %v622_v49 = vpop.f32.mrb[1].mxu1 }
 0x21c   :  { %v380_v50 = vpop.f32.mrb[2].mxu1 }
 0x21d   :  { %v383_v51 = vmax.f32 %v378_v48, 0.0  ;;  %v623_v52 = vpop.f32.mrb[3].mxu1 }
 0x21f   :  { %v384_v53 = vpack.c.bf16 %v383_v51, %v383_v51 }
 0x221   :  { %641 = vmatmul.mubr.bf16.vlgmr.msra.gmra.mrb[4].mxu0 %v384_v53 }
 0x2f4   :  { %v490_v55 = vpop.f32.mrb[4].mxu0 }
 0x2f5   :  { %v491_v56 = vadd.f32 %v555_v54, %v490_v55  ;;  %v642_v57 = vpop.f32.mrb[5].mxu0 }
 0x2f6   :  { %v493_v58 = vpop.f32.mrb[6].mxu0 }
 0x2f7   :  { %v643_v59 = vpop.f32.mrb[7].mxu0  ;;  %v497_v60 = vsel %vm496_vm1, %v491_v56, -inf }
 0x2f8   :  { %498 = vmax.xlane.f32.xlu0 %v497_v60 }
 0x385   :  { %v499_v61 = vpop.xlane.xlu0 %498 }
 0x386   :  { %v500_v62 = vsub.f32 %v491_v56, %v499_v61 }
 0x388   :  { %v501_v63 = vmul.f32 1.442695, %v500_v62 }
 0x38a   :  { %685 = vpow2.f32 %v501_v63 }
 0x394   :  { %v686_v0 = vpop.eup %685 }
 0x395   :  { %v503_v1 = vsel %vm496_vm1, %v686_v0, 0.0 }
 0x396   :  { %504 = vadd.xlane.f32.xlu0 %v503_v1 }
 0x423   :  { %v505_v2 = vpop.xlane.xlu0 %504 }
 0x424   :  { %687 = vlog2.f32 %v505_v2 }
 0x42e   :  { %v688_v3 = vpop.eup %687 }
 0x42f   :  { %v507_v4 = vmul.f32 0.6931472, %v688_v3 }
 0x431   :  { %v508_v5 = vsub.f32 %v500_v62, %v507_v4 }
 0x433   :  { %510 = vst.msk [vmem:[#allocation10] sm:$0x3] %vm509_vm2, %v508_v5 }
 0x434   :  { %788 = shalt.err (!%p785_p8)
}
 0x435   :  { %s789_s8 = scalar_lea.hbm %s959_s7, 32 }
 0x436   :  { %p790_p9 = scmp.ne.s32.totalorder %s959_s7, %s789_s8  ;;  %p793_p10 = scmp.lt.u32.totalorder %s789_s8, %s959_s7 }
 0x438   :  { %p795_p11 = pnand %p793_p10, %p790_p9 }
 0x43a   :  { %798 = shalt.err (!%p795_p11)
}
 0x43b   :  { %520 = dma.vmem_to_hbm [thread:$0]  %s518_s6, 32, %s959_s7, [#allocation4]  }
 0x43c   :  { %805 = dma.done.wait [#allocation4], 32  }
 0x43d   :  { %806 = vsyncadd [#allocation4], 4294967264 }
 0x43e   :  { %524 = vsyncpa [#allocation3], 1 }
 0x43f   :  { %525 = vsyncpa [#allocation6], 1 }
 0x440   :  { %526 = vsyncpa [#allocation9], 1 }
 0x441   :  { %527 = vsyncpa [#allocation4], 1 }

</bundles_post_ra>
